<compile_context>
chip_gen: v7x
topology: tpu7x:2x2x1
jax: 0.10.0
libtpu: 0.0.40
codegen_flags: <defaults>
</compile_context>

<pallas_src>
import functools

import jax
import jax.numpy as jnp
from jax.experimental import pallas as pl
from jax.experimental.pallas import tpu as pltpu


def _round_up(x, m):
    return (x + m - 1) // m * m


def _conv_block_kernel(w_ref, b_ref, x_ref, o_ref):
    # w_ref: (COUT_SUB, KKC_PAD)   x_ref: (KKC_PAD, TM)
    # b_ref: (COUT_SUB, 1)         o_ref: (COUT_SUB, TM)
    acc = jnp.dot(w_ref[...], x_ref[...], preferred_element_type=jnp.float32)
    o_ref[...] = jnp.maximum(acc + b_ref[...], 0.0).astype(o_ref.dtype)


@functools.partial(jax.jit, static_argnames=("stride", "padding"))
def conv2d_block_forward(x, weight, bias, *, stride, padding):
    """x: (N, Cin, H, W) f32; weight: (Cout, Cin, K, K); bias: (Cout,)."""
    N, Cin, H, W = x.shape
    Cout, _, K, _ = weight.shape
    s = stride

    Hp, Wp = H + 2 * padding, W + 2 * padding
    Ho = (Hp - K) // s + 1
    Wo = (Wp - K) // s + 1
    M = Ho * Wo
    KKC = K * K * Cin

    # ---- wrapper: zero pad + channel-major im2col, tap order (kh, kw, c) ----
    x_nhwc = jnp.transpose(x, (0, 2, 3, 1))                       # (N, H, W, Cin)
    x_pad = jnp.pad(x_nhwc, ((0, 0), (padding, padding),
                             (padding, padding), (0, 0)))          # (N, Hp, Wp, Cin)
    taps = []
    for kh in range(K):
        for kw in range(K):
            sl = x_pad[:, kh:kh + (Ho - 1) * s + 1:s,
                       kw:kw + (Wo - 1) * s + 1:s, :]               # (N, Ho, Wo, Cin)
            taps.append(jnp.transpose(sl, (0, 3, 1, 2)).reshape(N, Cin, M))
    cols_t = jnp.concatenate(taps, axis=1)                          # (N, KKC, M)

    # ---- tiling ----
    COUT_SUB = _round_up(Cout, 8)          # sublane-pad only (no 128-lane inflation)
    KKC_PAD = _round_up(KKC, 8)
    TM = min(512, _round_up(M, 128))       # lane-dense row tile
    if N == 1 and M > 128:
        # guarantee >= 2 grid steps so v7x's second TensorCore gets work
        TM = min(TM, _round_up(-(-M // 2), 128))
    M_pad = _round_up(M, TM)
    num_mb = M_pad // TM

    cols_t = jnp.pad(cols_t, ((0, 0), (0, KKC_PAD - KKC), (0, M_pad - M)))
    w_mat = jnp.transpose(weight, (0, 2, 3, 1)).reshape(Cout, KKC)  # (o, kh, kw, c)
    w_mat = jnp.pad(w_mat, ((0, COUT_SUB - Cout), (0, KKC_PAD - KKC)))
    b_mat = jnp.pad(bias.reshape(Cout, 1), ((0, COUT_SUB - Cout), (0, 0)))

    # cost estimate on the real (un-padded) work
    cost = pl.CostEstimate(
        flops=2 * N * M * KKC * Cout,
        transcendentals=0,
        bytes_accessed=4 * (N * KKC * M + Cout * KKC + Cout + N * Cout * M))

    out_t = pl.pallas_call(
        _conv_block_kernel,
        out_shape=jax.ShapeDtypeStruct((N, COUT_SUB, M_pad), jnp.float32),
        grid_spec=pltpu.PrefetchScalarGridSpec(
            num_scalar_prefetch=0,
            grid=(N, num_mb),
            in_specs=[
                pl.BlockSpec((COUT_SUB, KKC_PAD), lambda n, q: (0, 0)),      # weights (resident)
                pl.BlockSpec((COUT_SUB, 1), lambda n, q: (0, 0)),            # bias   (resident)
                pl.BlockSpec((None, KKC_PAD, TM), lambda n, q: (n, 0, q)),   # im2col tile
            ],
            out_specs=pl.BlockSpec((None, COUT_SUB, TM), lambda n, q: (n, 0, q)),
        ),
        compiler_params=pltpu.CompilerParams(
            dimension_semantics=("parallel", "parallel")),
        cost_estimate=cost,
    )(w_mat, b_mat, cols_t)

    # output is already channel-major: drop padding, reshape straight to NCHW
    return out_t[:, :Cout, :M].reshape(N, Cout, Ho, Wo)


if __name__ == "__main__":
    # Conv2dBlock(input_dim=4, output_dim=8, kernel_size=3, stride=1, padding=1,
    #             norm='none', activation='relu', pad_type='zero')
    N, Cin, H, W = 2, 4, 16, 16
    Cout, K, stride, padding = 8, 3, 1, 1

    key = jax.random.PRNGKey(0)
    kx, kw_, kb = jax.random.split(key, 3)

    x = jax.random.normal(kx, (N, Cin, H, W), dtype=jnp.float32)

    # PyTorch-style default init: U(-1/sqrt(fan_in), 1/sqrt(fan_in))
    fan_in = Cin * K * K
    bound = 1.0 / (fan_in ** 0.5)
    weight = jax.random.uniform(kw_, (Cout, Cin, K, K), jnp.float32, -bound, bound)
    bias = jax.random.uniform(kb, (Cout,), jnp.float32, -bound, bound)

    out = conv2d_block_forward(x, weight, bias, stride=stride, padding=padding)
    out = jax.block_until_ready(out)

    # Reference: XLA conv + bias + ReLU
    ref = jax.lax.conv_general_dilated(
        x, weight, window_strides=(stride, stride),
        padding=((padding, padding), (padding, padding)),
        dimension_numbers=("NCHW", "OIHW", "NCHW"))
    ref = jnp.maximum(ref + bias.reshape(1, Cout, 1, 1), 0.0)

    assert out.shape == (N, Cout, H, W), out.shape
    assert jnp.allclose(out, ref, atol=1e-4, rtol=1e-4)

    print("KERNEL_OK")
</pallas_src>

<mosaic_0001>
module attributes {stable_mosaic.version = 11 : i64} {
  func.func @_conv_block_kernel(%arg0: i32, %arg1: i32, %arg2: memref<8x40xf32, #tpu.memory_space<vmem>>, %arg3: memref<8x1xf32, #tpu.memory_space<vmem>>, %arg4: memref<1x40x256xf32, #tpu.memory_space<vmem>>, %arg5: memref<1x8x256xf32, #tpu.memory_space<vmem>>) attributes {dimension_semantics = [#tpu.dimension_semantics<parallel>, #tpu.dimension_semantics<parallel>], iteration_bounds = array<i64: 2, 1>, scalar_prefetch = 0 : i64, scratch_operands = 0 : i64, tpu.core_type = #tpu.core_type<tc>, window_params = [{pipeline_mode = #tpu.pipeline_mode<synchronous>, transform_indices = @transform_0, window_bounds = array<i64: 8, 40>}, {pipeline_mode = #tpu.pipeline_mode<synchronous>, transform_indices = @transform_1, window_bounds = array<i64: 8, 1>}, {transform_indices = @transform_2, window_bounds = array<i64: 1, 40, 256>}, {transform_indices = @transform_3, window_bounds = array<i64: 1, 8, 256>}]} {
    %c0 = arith.constant 0 : index
    %c0_0 = arith.constant 0 : index
    %0 = vector.load %arg2[%c0, %c0_0] : memref<8x40xf32, #tpu.memory_space<vmem>>, vector<8x40xf32>
    %c0_1 = arith.constant 0 : index
    %c0_2 = arith.constant 0 : index
    %c0_3 = arith.constant 0 : index
    %1 = vector.load %arg4[%c0_1, %c0_2, %c0_3] : memref<1x40x256xf32, #tpu.memory_space<vmem>>, vector<1x40x256xf32>
    %2 = vector.shape_cast %1 : vector<1x40x256xf32> to vector<40x256xf32>
    %cst = arith.constant dense<0.000000e+00> : vector<8x256xf32>
    %3 = tpu.matmul %0, %2, %cst {dimension_numbers = #tpu.dot_dimension_numbers<[1], [0], [0], [1], [0, 0, 1, 1], [], []>} : vector<8x40xf32>, vector<40x256xf32>, vector<8x256xf32> -> vector<8x256xf32>
    %c0_4 = arith.constant 0 : index
    %c0_5 = arith.constant 0 : index
    %4 = vector.load %arg3[%c0_4, %c0_5] : memref<8x1xf32, #tpu.memory_space<vmem>>, vector<8x1xf32>
    %5 = vector.broadcast %4 : vector<8x1xf32> to vector<8x256xf32>
    %6 = arith.addf %3, %5 : vector<8x256xf32>
    %cst_6 = arith.constant 0.000000e+00 : f32
    %7 = vector.broadcast %cst_6 : f32 to vector<8x256xf32>
    %8 = arith.maximumf %6, %7 : vector<8x256xf32>
    %c0_7 = arith.constant 0 : index
    %c0_8 = arith.constant 0 : index
    %c0_9 = arith.constant 0 : index
    %9 = vector.load %arg5[%c0_7, %c0_8, %c0_9] : memref<1x8x256xf32, #tpu.memory_space<vmem>>, vector<1x8x256xf32>
    %10 = vector.shape_cast %9 : vector<1x8x256xf32> to vector<8x256xf32>
    %11 = vector.shape_cast %8 : vector<8x256xf32> to vector<1x8x256xf32>
    tpu.vector_store %arg5[%c0_7, %c0_8, %c0_9], %11 {strides = array<i32>} : memref<1x8x256xf32, #tpu.memory_space<vmem>>, vector<1x8x256xf32>,
    return
  }
  func.func @transform_0(%arg0: i32, %arg1: i32) -> (i32, i32) {
    %c0_i32 = arith.constant 0 : i32
    %c0_i32_0 = arith.constant 0 : i32
    %c0_i32_1 = arith.constant 0 : i32
    return %c0_i32, %c0_i32_0 : i32, i32
  }
  func.func @transform_1(%arg0: i32, %arg1: i32) -> (i32, i32) {
    %c0_i32 = arith.constant 0 : i32
    %c0_i32_0 = arith.constant 0 : i32
    %c0_i32_1 = arith.constant 0 : i32
    return %c0_i32, %c0_i32_0 : i32, i32
  }
  func.func @transform_2(%arg0: i32, %arg1: i32) -> (i32, i32, i32) {
    %c0_i32 = arith.constant 0 : i32
    %c0_i32_0 = arith.constant 0 : i32
    return %arg0, %c0_i32, %arg1 : i32, i32, i32
  }
  func.func @transform_3(%arg0: i32, %arg1: i32) -> (i32, i32, i32) {
    %c0_i32 = arith.constant 0 : i32
    %c0_i32_0 = arith.constant 0 : i32
    return %arg0, %c0_i32, %arg1 : i32, i32, i32
  }
}

</mosaic_0001>

<bundles_post_ra>
// kernel: conv2d_block_forward.1
= control target key start
LH: loop header
LB: loop body
LE: loop exit
PB: predicated region body
PF: predicated region fallthrough
CT: control target
= control target key end

     0   :  { %s487_s12 = smov 0   ;;  %s489_s13 = smov 0   ;;  %s530_s0 = inlined_call_operand.vmem [shape: f32[8,40], index: 0, kind: input, shape index: {}]   ;;  %s531_s1 = inlined_call_operand.vmem [shape: f32[8,1], index: 1, kind: input, shape index: {}]   ;;  %s532_s2 = inlined_call_operand.vmem [shape: f32[2,40,256], index: 2, kind: input, shape index: {}]   ;;  %s533_s3 = inlined_call_operand.vmem [shape: f32[2,8,256], index: 3, kind: output, shape index: {}]  }
   0x1   :  { %s491_s14 = smov 0  }
   0x2 LB: > { %s25_s15 = sadd.s32 1, %s459_s13  ;;  %p397_p0 = scmp.ge.s32.totalorder %s463_s14, 1  ;;  %s463_s14 = sphi %s491_s14, %s13_s14   ;;  %s459_s13 = sphi %s489_s13, %s535_s13   ;;  %s455_s12 = sphi %s487_s12, %s534_s12  }
   0x3   : > { %p27_p1 = scmp.ge.s32.totalorder %s25_s15, 2  ;;  %p158_p2 = scmp.lt.s32.totalorder %s463_s14, 3 }
   0x5   : > { %s537_s15 = smov (%p27_p1, %s25_s15), 0  ;;  %p159_p3 = pnand %p397_p0, %p158_p2 }
   0x6   : > { %p191_p4 = scmp.lt.s32.totalorder (!%p159_p3), %s455_s12, 1  ;;  %v221_v0 = vld [vmem:[%s531_s1] sm:$0xff] (!%p159_p3)  ;;  %v465_v1 = vmov (!%p159_p3), 0.0   ;;  %v466_v2 = vmov (!%p159_p3), 0   ;;  %vm227_vm0 = vcmask (!%p159_p3), 326656  }
   0x7   : > { %162 = sbr.rel (%p159_p3) target bundleno = 249 (0xf9), region = 32  ;;  %295 = vmatprep.mubr.f32.mxu0 (!%p159_p3), %v465_v1  ;;  %440 = vset.pattern.permute.xlu0 (!%p159_p3), %v466_v2  ;;  %v210_v17 = vld [vmem:[%s530_s0] sm:$0xff] (!%p159_p3) }
   0x8   : > { %224 = vperm.xlu0 (!%p159_p3), %440, %v221_v0  }
   0xe   : > { %s539_s12 = smov (!%p191_p4, %s455_s12), 1 }
   0xf   : > { %s413_s18 = smul.u32 80, %s539_s12  ;;  %s404_s24 = sshll.u32 %s539_s12, 4 }
  0x10   : > { %s208_s27 = scalar_lea.vmem %s533_s3, %s404_s24 }
  0x11   : > { %s198_s21 = scalar_lea.vmem %s532_s2, %s413_s18 }
  0x12   : > { %v212_v3 = vld [vmem:[%s198_s21 + $0x8] sm:$0xff]  ;;  %v214_v4 = vld [vmem:[%s198_s21 + $0x18] sm:$0xff]  ;;  %v211_v5 = vld [vmem:[%s198_s21] sm:$0xff] }
  0x13   : > { %v405_v6 = vpack.c.bf16 %v214_v4, %v212_v3  ;;  %v213_v7 = vld [vmem:[%s198_s21 + $0x10] sm:$0xff]  ;;  %v216_v8 = vld [vmem:[%s198_s21 + $0x28] sm:$0xff]  ;;  %v218_v9 = vld [vmem:[%s198_s21 + $0x38] sm:$0xff] }
  0x14   : > { %v407_v10 = vpack.c.bf16 %v213_v7, %v211_v5  ;;  %v409_v11 = vpack.c.bf16 %v218_v9, %v216_v8  ;;  %v215_v12 = vld [vmem:[%s198_s21 + $0x20] sm:$0xff]  ;;  %v217_v13 = vld [vmem:[%s198_s21 + $0x30] sm:$0xff]  ;;  %v220_v15 = vld [vmem:[%s198_s21 + $0x48] sm:$0xff] }
  0x15   : > { %406 = vmatprep.subr.bf16.mxu0 %v405_v6  ;;  %v411_v14 = vpack.c.bf16 %v217_v13, %v215_v12  ;;  %v219_v16 = vld [vmem:[%s198_s21 + $0x40] sm:$0xff] }
  0x16   : > { %408 = vmatpush1.bf16.msra.mxu0 %v407_v10 }
  0x17   : > { %410 = vmatprep.subr.bf16.mxu0 %v409_v11 }
  0x1a   : > { %412 = vmatpush1.bf16.msra.mxu0 %v411_v14 }
  0x1b   : > { %239 = vmatprep.subr.mxu0 %v220_v15 }
  0x1e   : > { %240 = vmatpush1.msra.mxu0 %v219_v16 }
  0x1f   : > { %401 = vmatmul.mubr.msk.f32.vlgmr.msra.gmra.mrb[0].mxu0 %vm227_vm0, %v210_v17 }
  0x87   : > { %v225_v18 = vpop.permute.xlu0 %224 }
  0xf2   : > { %v297_v19 = vpop.f32.mrb[0].mxu0 }
  0xf3   : > { %v298_v20 = vadd.f32 %v297_v19, %v225_v18  ;;  %v299_v21 = vpop.f32.mrb[1].mxu0 }
  0xf4   : > { %v300_v22 = vadd.f32 %v299_v21, %v225_v18 }
  0xf5   : > { %v302_v23 = vmax.f32 %v298_v20, 0.0 }
  0xf6   : > { %v303_v24 = vmax.f32 %v300_v22, 0.0 }
  0xf7   : > { %304 = vst [vmem:[%s208_s27] sm:$0xff] %v302_v23 }
  0xf8   : > { %305 = vst [vmem:[%s208_s27 + $0x8] sm:$0xff] %v303_v24 }
  0xf9 PF: > { %s13_s14 = sadd.s32 1, %s463_s14   ;;  %s534_s12 = smov %s459_s13 }
  0xfa   : > { %p10_p5 = scmp.ge.s32.totalorder %s13_s14, 4   ;;  %s535_s13 = smov %s537_s15 }
  0xfc   :  { %12 = sbr.rel (!%p10_p5) target bundleno = 2 (0x2), region = 62 }

</bundles_post_ra>
